<compile_context>
chip_gen: v7x
topology: tpu7x:2x2x1
jax: 0.10.0
libtpu: 0.0.40
codegen_flags: <defaults>
</compile_context>

<pallas_src>
import jax
import jax.numpy as jnp
from jax.experimental import pallas as pl
from jax.experimental.pallas import tpu as pltpu


def _round_up(v, m):
    return (v + m - 1) // m * m


def _vmem_capacity_bytes():
    """Physical VMEM per TensorCore; conservative fallback if query fails."""
    try:
        cap = int(pltpu.get_tpu_info().vmem_capacity_bytes)
        if cap > 0:
            return cap
    except Exception:
        pass
    return 64 * 1024 * 1024  # v7x-sized fallback: safe on every generation


def prepare_concat_squash_params(w, b, wg, bg, wb):
    """One-time parameter preparation (hoisted out of the per-call path).

    Args (all weights pre-transposed to (in_features, out_features)):
      w:  (dim_in,  dim_out)            _layer weight
      b:  (dim_out,) or (1, dim_out)    _layer bias
      wg: (dim_ctx, dim_out)            _hyper_gate weight
      bg: (dim_out,) or (1, dim_out)    _hyper_gate bias
      wb: (dim_ctx, dim_out)            _hyper_bias weight (no bias)

    Pads the output-feature dim with zeros up to a multiple of the chosen
    out-feature tile (itself a multiple of 128) so the kernel's stores are
    lane-dense. Zero columns only produce zeros in padded output lanes that
    the wrapper slices off, so numerics are unaffected.
    """
    w = jnp.asarray(w, jnp.float32)
    wg = jnp.asarray(wg, jnp.float32)
    wb = jnp.asarray(wb, jnp.float32)
    dim_in, dim_out = w.shape
    dim_ctx = wg.shape[0]

    # Out-feature tile: keep the (double-buffered) resident weights within
    # ~1/3 of usable VMEM. On v7x (64 MiB) large layers therefore get a
    # dim_out grid axis instead of OOMing; on v5e/v6e (128 MiB) they usually
    # stay fully resident (a single out tile).
    usable = int(_vmem_capacity_bytes() * 0.75)
    per_col = 2 * 4 * (dim_in + 2 * dim_ctx + 2)      # bytes per output column
    to = max(128, ((usable // 3) // per_col) // 128 * 128)
    to = min(to, _round_up(dim_out, 128))

    dp = _round_up(dim_out, to)                        # dp % to == 0
    pad_o = dp - dim_out

    def pad_cols(a):
        return jnp.pad(a, ((0, 0), (0, pad_o)))

    return dict(
        w=pad_cols(w),
        b=pad_cols(jnp.asarray(b, jnp.float32).reshape(1, dim_out)),
        wg=pad_cols(wg),
        bg=pad_cols(jnp.asarray(bg, jnp.float32).reshape(1, dim_out)),
        wb=pad_cols(wb),
        dim_out=dim_out,
        out_tile=to,
    )


def _concat_squash_kernel(ctx_ref, x_ref, w_ref, b_ref, wg_ref, bg_ref, wb_ref,
                          out_ref, gate_ref, fbias_ref):
    # INVARIANT: grid axis 2 (the N axis) must stay "arbitrary" (sequential,
    # starting at ni == 0 for every (batch tile, out tile)). The gate /
    # fused-bias scratch computed below is reused by all later N steps of the
    # same (batch tile, out tile); marking that axis parallel or reordering
    # the grid would read stale scratch.
    @pl.when(pl.program_id(2) == 0)
    def _():
        c = ctx_ref[...]                                              # (TB, dim_ctx)
        gate = jax.nn.sigmoid(
            jnp.dot(c, wg_ref[...], preferred_element_type=jnp.float32)
            + bg_ref[...])                                            # (TB, TO)
        hbias = jnp.dot(c, wb_ref[...], preferred_element_type=jnp.float32)
        gate_ref[...] = gate
        # Fold the layer bias into the cached per-batch bias:
        #   (x@W + b) * gate + hbias == (x@W) * gate + (b * gate + hbias)
        # so the hot loop does a single multiply-add pass over the big tile.
        fbias_ref[...] = b_ref[...] * gate + hbias

    tb, tn, dim_in = x_ref.shape
    to = out_ref.shape[-1]
    # One large MXU matmul over all TB*TN rows of this step.
    x2d = x_ref[...].reshape(tb * tn, dim_in)
    h = jnp.dot(x2d, w_ref[...], preferred_element_type=jnp.float32)  # (TB*TN, TO)
    h = h.reshape(tb, tn, to)
    out = h * gate_ref[...][:, None, :] + fbias_ref[...][:, None, :]
    out_ref[...] = out.astype(out_ref.dtype)


def concat_squash_linear(ctx, x, params):
    """ctx: (B, 1, dim_ctx), x: (B, N, dim_in) -> (B, N, dim_out)."""
    B, N, dim_in = x.shape
    dim_ctx = ctx.shape[-1]
    dim_out = params["dim_out"]
    to = params["out_tile"]
    w_p, b_p, wg_p, bg_p, wb_p = (params[k] for k in ("w", "b", "wg", "bg", "wb"))
    dp = w_p.shape[1]
    assert w_p.shape[0] == dim_in and wg_p.shape[0] == dim_ctx

    ctx2 = ctx.reshape(B, dim_ctx)          # squeeze the size-1 axis (no copy)
    xb = x.dtype.itemsize                   # budgets derived from real dtypes

    # ---- chip-aware VMEM budget (explicit, not the 16/32 MiB default).
    vmem_cap = _vmem_capacity_bytes()
    usable = int(vmem_cap * 0.75)           # headroom for compiler internals
    resident_w = 2 * 4 * to * (dim_in + 2 * dim_ctx + 2)   # weights, dbl-buffered
    pipe_budget = max(usable - resident_w, 2 * 1024 * 1024)
    bytes_per_row = xb * (dim_in + to)      # one x row + one out row
    rows_target = int(max(8, min(pipe_budget // (2 * bytes_per_row), 2048)))

    # ---- batch tile (second-minor of the ctx block: multiple of 8 or == B).
    if B <= 8:
        tb = B
    else:
        tb = 8
        n_ceil8 = _round_up(N, 8)
        # Grow tb only when N alone cannot fill the row target, keeping at
        # least two batch programs so v7x's second TensorCore gets a shard.
        while (tb * n_ceil8 < rows_target and tb * 2 <= 64
               and pl.cdiv(B, 2 * tb) >= 2):
            tb *= 2

    # ---- N tile: a multiple of 8 (ragged last tile is fine) or full extent.
    tn_target = max(8, (rows_target // tb) // 8 * 8)
    tn = N if tn_target >= N else tn_target

    grid = (pl.cdiv(B, tb), dp // to, pl.cdiv(N, tn))

    # ---- explicit VMEM limit from the real footprint + 25% headroom.
    footprint = (resident_w
                 + 2 * tb * tn * xb * (dim_in + to)         # x / out pipeline
                 + 2 * tb * dim_ctx * ctx2.dtype.itemsize   # ctx pipeline
                 + 2 * tb * to * 4)                         # gate + fused-bias scratch
    vmem_limit = min(max(int(footprint * 1.25),
                         min(32 * 1024 * 1024, vmem_cap)),
                     vmem_cap)

    out = pl.pallas_call(
        _concat_squash_kernel,
        out_shape=jax.ShapeDtypeStruct((B, N, dp), x.dtype),
        grid=grid,
        in_specs=[
            pl.BlockSpec((tb, dim_ctx), lambda bi, oi, ni: (bi, 0)),          # ctx
            pl.BlockSpec((tb, tn, dim_in), lambda bi, oi, ni: (bi, ni, 0)),   # x
            pl.BlockSpec((dim_in, to), lambda bi, oi, ni: (0, oi)),           # W (resident per out tile)
            pl.BlockSpec((1, to), lambda bi, oi, ni: (0, oi)),                # b
            pl.BlockSpec((dim_ctx, to), lambda bi, oi, ni: (0, oi)),          # Wg
            pl.BlockSpec((1, to), lambda bi, oi, ni: (0, oi)),                # bg
            pl.BlockSpec((dim_ctx, to), lambda bi, oi, ni: (0, oi)),          # Wb
        ],
        out_specs=pl.BlockSpec((tb, tn, to), lambda bi, oi, ni: (bi, ni, oi)),
        scratch_shapes=[pltpu.VMEM((tb, to), jnp.float32),    # gate cache
                        pltpu.VMEM((tb, to), jnp.float32)],   # fused-bias cache
        compiler_params=pltpu.CompilerParams(
            dimension_semantics=("parallel", "parallel", "arbitrary"),
            vmem_limit_bytes=vmem_limit),
    )(ctx2, x, w_p, b_p, wg_p, bg_p, wb_p)

    # Only the lane padding of dim_out is stripped; B / N carry no padding.
    return out[..., :dim_out] if dp != dim_out else out


def _init_linear(key, fan_in, fan_out, with_bias=True):
    """Deterministic PyTorch-style uniform init; weight returned transposed."""
    kw, kb = jax.random.split(key)
    bound = 1.0 / (fan_in ** 0.5)
    w = jax.random.uniform(kw, (fan_in, fan_out), jnp.float32, -bound, bound)
    if not with_bias:
        return w, None
    b = jax.random.uniform(kb, (1, fan_out), jnp.float32, -bound, bound)
    return w, b


if __name__ == "__main__":
    B, N = 2, 8
    dim_in, dim_out, dim_ctx = 32, 32, 8

    key = jax.random.PRNGKey(0)
    k_ctx, k_x, k_l, k_g, k_b = jax.random.split(key, 5)

    ctx = jax.random.normal(k_ctx, (B, 1, dim_ctx), jnp.float32)
    x = jax.random.normal(k_x, (B, N, dim_in), jnp.float32)

    w, b = _init_linear(k_l, dim_in, dim_out)                      # _layer
    wg, bg = _init_linear(k_g, dim_ctx, dim_out)                   # _hyper_gate
    wb, _ = _init_linear(k_b, dim_ctx, dim_out, with_bias=False)   # _hyper_bias

    params = prepare_concat_squash_params(w, b, wg, bg, wb)        # one-time prep
    out = concat_squash_linear(ctx, x, params)
    out = jax.block_until_ready(out)

    # Pure-JAX reference check.
    gate_ref = jax.nn.sigmoid(jnp.einsum("boc,cd->bod", ctx, wg) + bg)
    bias_ref = jnp.einsum("boc,cd->bod", ctx, wb)
    ref = (jnp.einsum("bnc,cd->bnd", x, w) + b) * gate_ref + bias_ref
    assert out.shape == ref.shape, "shape mismatch vs reference"
    assert jnp.allclose(out, ref, atol=1e-5, rtol=1e-5), "mismatch vs reference"

    print("KERNEL_OK")
</pallas_src>

<mosaic_0001>
module attributes {stable_mosaic.version = 11 : i64} {
  func.func @_concat_squash_kernel(%arg0: i32, %arg1: i32, %arg2: i32, %arg3: memref<2x8xf32, #tpu.memory_space<vmem>>, %arg4: memref<2x8x32xf32, #tpu.memory_space<vmem>>, %arg5: memref<32x128xf32, #tpu.memory_space<vmem>>, %arg6: memref<1x128xf32, #tpu.memory_space<vmem>>, %arg7: memref<8x128xf32, #tpu.memory_space<vmem>>, %arg8: memref<1x128xf32, #tpu.memory_space<vmem>>, %arg9: memref<8x128xf32, #tpu.memory_space<vmem>>, %arg10: memref<2x8x128xf32, #tpu.memory_space<vmem>>, %arg11: memref<2x128xf32, #tpu.memory_space<vmem>>, %arg12: memref<2x128xf32, #tpu.memory_space<vmem>>) attributes {dimension_semantics = [#tpu.dimension_semantics<parallel>, #tpu.dimension_semantics<parallel>, #tpu.dimension_semantics<arbitrary>], iteration_bounds = array<i64: 1, 1, 1>, scalar_prefetch = 0 : i64, scratch_operands = 2 : i64, tpu.core_type = #tpu.core_type<tc>, window_params = [{transform_indices = @transform_0, window_bounds = array<i64: 2, 8>}, {transform_indices = @transform_1, window_bounds = array<i64: 2, 8, 32>}, {transform_indices = @transform_2, window_bounds = array<i64: 32, 128>}, {transform_indices = @transform_3, window_bounds = array<i64: 1, 128>}, {transform_indices = @transform_4, window_bounds = array<i64: 8, 128>}, {transform_indices = @transform_5, window_bounds = array<i64: 1, 128>}, {transform_indices = @transform_6, window_bounds = array<i64: 8, 128>}, {transform_indices = @transform_7, window_bounds = array<i64: 2, 8, 128>}]} {
    %c0_i32 = arith.constant 0 : i32
    %0 = arith.cmpi eq, %arg2, %c0_i32 : i32
    %1 = arith.extui %0 : i1 to i32
    %c0_i32_0 = arith.constant 0 : i32
    %2 = arith.cmpi ne, %1, %c0_i32_0 : i32
    scf.if %2 {
      %c0_12 = arith.constant 0 : index
      %c0_13 = arith.constant 0 : index
      %17 = vector.load %arg3[%c0_12, %c0_13] : memref<2x8xf32, #tpu.memory_space<vmem>>, vector<2x8xf32>
      %c0_14 = arith.constant 0 : index
      %c0_15 = arith.constant 0 : index
      %18 = vector.load %arg7[%c0_14, %c0_15] : memref<8x128xf32, #tpu.memory_space<vmem>>, vector<8x128xf32>
      %cst_16 = arith.constant dense<0.000000e+00> : vector<2x128xf32>
      %19 = tpu.matmul %17, %18, %cst_16 {dimension_numbers = #tpu.dot_dimension_numbers<[1], [0], [0], [1], [0, 0, 1, 1], [], []>} : vector<2x8xf32>, vector<8x128xf32>, vector<2x128xf32> -> vector<2x128xf32>
      %c0_17 = arith.constant 0 : index
      %c0_18 = arith.constant 0 : index
      %20 = vector.load %arg8[%c0_17, %c0_18] : memref<1x128xf32, #tpu.memory_space<vmem>>, vector<1x128xf32>
      %21 = vector.broadcast %20 : vector<1x128xf32> to vector<2x128xf32>
      %22 = arith.addf %19, %21 : vector<2x128xf32>
      %23 = arith.negf %22 : vector<2x128xf32>
      %24 = math.exp %23 : vector<2x128xf32>
      %cst_19 = arith.constant 1.000000e+00 : f32
      %25 = vector.broadcast %cst_19 : f32 to vector<2x128xf32>
      %26 = arith.addf %25, %24 : vector<2x128xf32>
      %27 = arith.divf %25, %26 : vector<2x128xf32>
      %c0_20 = arith.constant 0 : index
      %c0_21 = arith.constant 0 : index
      %28 = vector.load %arg9[%c0_20, %c0_21] : memref<8x128xf32, #tpu.memory_space<vmem>>, vector<8x128xf32>
      %cst_22 = arith.constant dense<0.000000e+00> : vector<2x128xf32>
      %29 = tpu.matmul %17, %28, %cst_22 {dimension_numbers = #tpu.dot_dimension_numbers<[1], [0], [0], [1], [0, 0, 1, 1], [], []>} : vector<2x8xf32>, vector<8x128xf32>, vector<2x128xf32> -> vector<2x128xf32>
      %c0_23 = arith.constant 0 : index
      %c0_24 = arith.constant 0 : index
      %30 = vector.load %arg11[%c0_23, %c0_24] : memref<2x128xf32, #tpu.memory_space<vmem>>, vector<2x128xf32>
      tpu.vector_store %arg11[%c0_23, %c0_24], %27 {strides = array<i32>} : memref<2x128xf32, #tpu.memory_space<vmem>>, vector<2x128xf32>,
      %c0_25 = arith.constant 0 : index
      %c0_26 = arith.constant 0 : index
      %31 = vector.load %arg6[%c0_25, %c0_26] : memref<1x128xf32, #tpu.memory_space<vmem>>, vector<1x128xf32>
      %32 = vector.broadcast %31 : vector<1x128xf32> to vector<2x128xf32>
      %33 = arith.mulf %32, %27 : vector<2x128xf32>
      %34 = arith.addf %33, %29 : vector<2x128xf32>
      %c0_27 = arith.constant 0 : index
      %c0_28 = arith.constant 0 : index
      %35 = vector.load %arg12[%c0_27, %c0_28] : memref<2x128xf32, #tpu.memory_space<vmem>>, vector<2x128xf32>
      tpu.vector_store %arg12[%c0_27, %c0_28], %34 {strides = array<i32>} : memref<2x128xf32, #tpu.memory_space<vmem>>, vector<2x128xf32>,
    } else {
    }
    %c0 = arith.constant 0 : index
    %c0_1 = arith.constant 0 : index
    %c0_2 = arith.constant 0 : index
    %3 = vector.load %arg4[%c0, %c0_1, %c0_2] : memref<2x8x32xf32, #tpu.memory_space<vmem>>, vector<2x8x32xf32>
    %4 = vector.shape_cast %3 : vector<2x8x32xf32> to vector<16x32xf32>
    %c0_3 = arith.constant 0 : index
    %c0_4 = arith.constant 0 : index
    %5 = vector.load %arg5[%c0_3, %c0_4] : memref<32x128xf32, #tpu.memory_space<vmem>>, vector<32x128xf32>
    %cst = arith.constant dense<0.000000e+00> : vector<16x128xf32>
    %6 = tpu.matmul %4, %5, %cst {dimension_numbers = #tpu.dot_dimension_numbers<[1], [0], [0], [1], [0, 0, 1, 1], [], []>} : vector<16x32xf32>, vector<32x128xf32>, vector<16x128xf32> -> vector<16x128xf32>
    %7 = vector.shape_cast %6 : vector<16x128xf32> to vector<2x8x128xf32>
    %c0_5 = arith.constant 0 : index
    %c0_6 = arith.constant 0 : index
    %8 = vector.load %arg11[%c0_5, %c0_6] : memref<2x128xf32, #tpu.memory_space<vmem>>, vector<2x128xf32>
    %9 = vector.shape_cast %8 : vector<2x128xf32> to vector<2x1x128xf32>
    %10 = vector.broadcast %9 : vector<2x1x128xf32> to vector<2x8x128xf32>
    %11 = arith.mulf %7, %10 : vector<2x8x128xf32>
    %c0_7 = arith.constant 0 : index
    %c0_8 = arith.constant 0 : index
    %12 = vector.load %arg12[%c0_7, %c0_8] : memref<2x128xf32, #tpu.memory_space<vmem>>, vector<2x128xf32>
    %13 = vector.shape_cast %12 : vector<2x128xf32> to vector<2x1x128xf32>
    %14 = vector.broadcast %13 : vector<2x1x128xf32> to vector<2x8x128xf32>
    %15 = arith.addf %11, %14 : vector<2x8x128xf32>
    %c0_9 = arith.constant 0 : index
    %c0_10 = arith.constant 0 : index
    %c0_11 = arith.constant 0 : index
    %16 = vector.load %arg10[%c0_9, %c0_10, %c0_11] : memref<2x8x128xf32, #tpu.memory_space<vmem>>, vector<2x8x128xf32>
    tpu.vector_store %arg10[%c0_9, %c0_10, %c0_11], %15 {strides = array<i32>} : memref<2x8x128xf32, #tpu.memory_space<vmem>>, vector<2x8x128xf32>,
    return
  }
  func.func @transform_0(%arg0: i32, %arg1: i32, %arg2: i32) -> (i32, i32) {
    %c0_i32 = arith.constant 0 : i32
    %c0_i32_0 = arith.constant 0 : i32
    return %arg0, %c0_i32 : i32, i32
  }
  func.func @transform_1(%arg0: i32, %arg1: i32, %arg2: i32) -> (i32, i32, i32) {
    %c0_i32 = arith.constant 0 : i32
    %c0_i32_0 = arith.constant 0 : i32
    return %arg0, %arg2, %c0_i32 : i32, i32, i32
  }
  func.func @transform_2(%arg0: i32, %arg1: i32, %arg2: i32) -> (i32, i32) {
    %c0_i32 = arith.constant 0 : i32
    %c0_i32_0 = arith.constant 0 : i32
    return %c0_i32, %arg1 : i32, i32
  }
  func.func @transform_3(%arg0: i32, %arg1: i32, %arg2: i32) -> (i32, i32) {
    %c0_i32 = arith.constant 0 : i32
    %c0_i32_0 = arith.constant 0 : i32
    return %c0_i32, %arg1 : i32, i32
  }
  func.func @transform_4(%arg0: i32, %arg1: i32, %arg2: i32) -> (i32, i32) {
    %c0_i32 = arith.constant 0 : i32
    %c0_i32_0 = arith.constant 0 : i32
    return %c0_i32, %arg1 : i32, i32
  }
  func.func @transform_5(%arg0: i32, %arg1: i32, %arg2: i32) -> (i32, i32) {
    %c0_i32 = arith.constant 0 : i32
    %c0_i32_0 = arith.constant 0 : i32
    return %c0_i32, %arg1 : i32, i32
  }
  func.func @transform_6(%arg0: i32, %arg1: i32, %arg2: i32) -> (i32, i32) {
    %c0_i32 = arith.constant 0 : i32
    %c0_i32_0 = arith.constant 0 : i32
    return %c0_i32, %arg1 : i32, i32
  }
  func.func @transform_7(%arg0: i32, %arg1: i32, %arg2: i32) -> (i32, i32, i32) {
    %c0_i32 = arith.constant 0 : i32
    return %arg0, %arg2, %arg1 : i32, i32, i32
  }
}

</mosaic_0001>

<bundles_post_ra>
// kernel: tpu_custom_call.1
= control target key start
LH: loop header
LB: loop body
LE: loop exit
PB: predicated region body
PF: predicated region fallthrough
CT: control target
= control target key end

     0   :  { %12 = vsyncpa [#allocation5], 0  ;;  %s700_s0 = inlined_call_operand.hbm [shape: f32[2,8], index: 0, kind: input, shape index: {}]   ;;  %s701_s1 = inlined_call_operand.hbm [shape: f32[2,8,32], index: 1, kind: input, shape index: {}]   ;;  %s702_s2 = inlined_call_operand.hbm [shape: f32[32,128], index: 2, kind: input, shape index: {}]   ;;  %s703_s3 = inlined_call_operand.vmem [shape: f32[1,128], index: 3, kind: input, shape index: {}]   ;;  %s704_s4 = inlined_call_operand.vmem [shape: f32[8,128], index: 4, kind: input, shape index: {}]   ;;  %s705_s5 = inlined_call_operand.vmem [shape: f32[1,128], index: 5, kind: input, shape index: {}]   ;;  %s706_s6 = inlined_call_operand.vmem [shape: f32[8,128], index: 6, kind: input, shape index: {}]   ;;  %s707_s7 = inlined_call_operand.hbm [shape: f32[2,8,128], index: 7, kind: output, shape index: {}]  }
   0x1   :  { %13 = vsyncpa [#allocation8], 0 }
   0x2   :  { %14 = vsyncpa [#allocation6], 0  ;;  %s576_s24 = smov [#allocation7]   ;;  %s482_s28 = scalar_lea.hbm %s701_s1, 256 }
   0x3   :  { %s30_s25 = sshll.u32 %s576_s24, 4  ;;  %p483_p0 = scmp.ne.s32.totalorder %s701_s1, %s482_s28  ;;  %s31_s25 = int_to_ptr.vmem [resolvable:$true] %s30_s25 }
   0x4   :  { %p486_p1 = scmp.lt.u32.totalorder %s482_s28, %s701_s1 }
   0x6   :  { %p488_p2 = pnand %p486_p1, %p483_p0 }
   0x8   :  { %491 = shalt.err (!%p488_p2)
}
   0x9   :  { %s492_s10 = scalar_lea.vmem %s31_s25, 256  ;;  %p497_p4 = scmp.lt.s32.totalorder %s31_s25, %s31_s25 }
   0xa   :  { %p493_p3 = scmp.ne.s32.totalorder %s31_s25, %s492_s10  ;;  %p498_p5 = scmp.lt.s32.totalorder %s492_s10, %s492_s10 }
   0xc   :  { %p499_p6 = por %p498_p5, %p497_p4 }
   0xe   :  { %p500_p7 = pnand %p499_p6, %p493_p3 }
  0x10   :  { %503 = shalt.err (!%p500_p7)
}
  0x11   :  { %s577_s11 = smov 128   ;;  %s578_s12 = smov 8  }
  0x12   :  { %36 = dma.hbm_to_vmem [thread:$0]  %s701_s1, 256, %s31_s25, [#allocation8], %s577_s11, %s577_s11, %s578_s12  }
  0x13   :  { %s579_s15 = smov [#allocation4]   ;;  %s580_s17 = smov [#allocation9]  }
  0x14   :  { %s21_s16 = sshll.u32 %s579_s15, 4  ;;  %s42_s18 = sshll.u32 %s580_s17, 4  ;;  %s22_s16 = int_to_ptr.vmem [resolvable:$true] %s21_s16  ;;  %s43_s18 = int_to_ptr.vmem [resolvable:$true] %s42_s18 }
  0x15   :  { %s504_s21 = scalar_lea.hbm %s700_s0, 32 }
  0x16   :  { %p505_p8 = scmp.ne.s32.totalorder %s700_s0, %s504_s21  ;;  %p508_p9 = scmp.lt.u32.totalorder %s504_s21, %s700_s0 }
  0x18   :  { %p510_p10 = pnand %p508_p9, %p505_p8 }
  0x1a   :  { %513 = shalt.err (!%p510_p10)
}
  0x1b   :  { %s514_s1 = scalar_lea.vmem %s22_s16, 32  ;;  %p519_p12 = scmp.lt.s32.totalorder %s22_s16, %s22_s16 }
  0x1c   :  { %p515_p11 = scmp.ne.s32.totalorder %s22_s16, %s514_s1  ;;  %p520_p13 = scmp.lt.s32.totalorder %s514_s1, %s514_s1 }
  0x1e   :  { %p521_p0 = por %p520_p13, %p519_p12 }
  0x20   :  { %p522_p1 = pnand %p521_p0, %p515_p11 }
  0x22   :  { %525 = shalt.err (!%p522_p1)
}
  0x23   :  { %24 = dma.hbm_to_vmem [thread:$0]  %s700_s0, 32, %s22_s16, [#allocation5]  }
  0x24   :  { %s526_s30 = scalar_lea.hbm %s702_s2, 512 }
  0x25   :  { %p527_p2 = scmp.ne.s32.totalorder %s702_s2, %s526_s30  ;;  %p530_p3 = scmp.lt.u32.totalorder %s526_s30, %s702_s2 }
  0x27   :  { %p532_p4 = pnand %p530_p3, %p527_p2 }
  0x29   :  { %535 = shalt.err (!%p532_p4)
}
  0x2a   :  { %s536_s14 = scalar_lea.vmem %s43_s18, 512  ;;  %p541_p6 = scmp.lt.s32.totalorder %s43_s18, %s43_s18 }
  0x2b   :  { %p537_p5 = scmp.ne.s32.totalorder %s43_s18, %s536_s14  ;;  %p542_p7 = scmp.lt.s32.totalorder %s536_s14, %s536_s14 }
  0x2d   :  { %p543_p8 = por %p542_p7, %p541_p6 }
  0x2f   :  { %p544_p9 = pnand %p543_p8, %p537_p5 }
  0x31   :  { %547 = shalt.err (!%p544_p9)
}
  0x32   :  { %48 = dma.hbm_to_vmem [thread:$0]  %s702_s2, 512, %s43_s18, [#allocation8], %s577_s11, %s577_s11, %s578_s12  }
  0x33   :  { %570 = dma.done.wait [#allocation5], 32  }
  0x34   :  { %571 = vsyncadd [#allocation5], 4294967264 }
  0x35   :  { %572 = dma.done.wait [#allocation8], 768  }
  0x36   :  { %573 = vsyncadd [#allocation8], 4294966528  ;;  %v581_v0 = vmov 0.0   ;;  %vm582_vm0 = vmmov 0   ;;  %vm79_vm1 = vcmask 64512   ;;  %v71_v1 = vld [vmem:[%s704_s4] sm:$0xff]  ;;  %v342_v25 = vlaneseq }
  0x37   :  { %440 = vmatprep.subr.mxu1 %v581_v0  ;;  %442 = vmatprep.mubr.msk.f32.mxu1 %vm582_vm0, %v581_v0  ;;  %v70_v2 = vld [vmem:[#allocation4] sm:$0x3]  ;;  %v159_v3 = vld [vmem:[%s706_s6] sm:$0xff]  ;;  %v245_v6 = vld [vmem:[#allocation9 + $0x10] sm:$0xff]  ;;  %vm247_vm2 = vcmask 261120  }
  0x38   :  { %441 = vmatpush3.msra.mxu1 %v71_v1  ;;  %v243_v4 = vld [vmem:[#allocation9] sm:$0xff]  ;;  %v244_v5 = vld [vmem:[#allocation9 + $0x8] sm:$0xff]  ;;  %v246_v8 = vld [vmem:[#allocation9 + $0x18] sm:$0xff]  ;;  %v583_v23 = vmov 1966171168   ;;  %v343_v30 = vshrl.u32 %v342_v25, 7 }
  0x39   :  { %443 = vmatmul.mubr.msk.f32.vlgmr.msra.gmra.mrb[0].mxu1 %vm79_vm1, %v70_v2  ;;  %445 = vmatprep.subr.mxu1 %v581_v0  ;;  %v461_v7 = vpack.c.bf16 %v244_v5, %v243_v4  ;;  %v241_v9 = vld [vmem:[#allocation7] sm:$0xff]  ;;  %v465_v10 = vpack.c.bf16 %v246_v8, %v245_v6  ;;  %v242_v11 = vld [vmem:[#allocation7 + $0x8] sm:$0xff]  ;;  %v340_v24 = vunpack.c.l.s4 %v583_v23 }
  0x3a   :  { %446 = vmatpush3.msra.mxu1 %v159_v3  ;;  %447 = vmatprep.mubr.msk.f32.mxu1 %vm582_vm0, %v581_v0  ;;  %v421_v12 = vld [vmem:[%s705_s5] ss:$0 sm:$0xff]  ;;  %v355_v33 = vsub.s32 0, %v343_v30 }
  0x3b   :  { %462 = vmatprep.subr.bf16.mxu0 %v461_v7  ;;  %458 = vmatprep.mubr.msk.f32.mxu0 %vm247_vm2, %v241_v9  ;;  %v425_v26 = vld [vmem:[%s703_s3] ss:$0 sm:$0xff]  ;;  %v341_v29 = vunpack.c.0.s8 %v340_v24  ;;  %s584_s3 = smov [#allocation10]  }
  0x3c   :  { %464 = vmatpush3.bf16.msra.mxu0 %v461_v7  ;;  %s408_s5 = sshll.u32 %s584_s3, 4  ;;  %s409_s5 = int_to_ptr.vmem [resolvable:$true] %s408_s5 }
  0x3d   :  { %448 = vmatmul.mubr.msk.f32.vlgmr.msra.gmra.mrb[2].mxu1 %vm79_vm1, %v70_v2  ;;  %466 = vmatprep.subr.bf16.mxu0 %v465_v10  ;;  %v344_v32 = vsub.s32 %v341_v29, %v343_v30  ;;  %s548_s21 = scalar_lea.vmem %s409_s5, 256  ;;  %p553_p11 = scmp.lt.s32.totalorder %s409_s5, %s409_s5 }
  0x3e   :  { %p549_p10 = scmp.ne.s32.totalorder %s409_s5, %s548_s21  ;;  %p554_p12 = scmp.lt.s32.totalorder %s548_s21, %s548_s21 }
  0x40   :  { %468 = vmatpush3.bf16.msra.mxu0 %v465_v10  ;;  %p555_p13 = por %p554_p12, %p553_p11 }
  0x42   :  { %p556_p0 = pnand %p555_p13, %p549_p10 }
  0x43   :  { %459 = vmatmul.mubr.msk.f32.vlgmr.msra.gmra.mrb[0].mxu0 %vm247_vm2, %v242_v11 }
 0x10c   :  { %v149_v13 = vpop.f32.mrb[0].mxu1 }
 0x10d   :  { %v150_v14 = vadd.f32 %v421_v12, %v149_v13  ;;  %v444_v15 = vpop.f32.mrb[1].mxu1 }
 0x10f   :  { %v423_v16 = vmul.f32 -1.442695, %v150_v14 }
 0x110   :  { %v226_v17 = vpop.f32.mrb[2].mxu1 }
 0x111   :  { %478 = vpow2.f32 %v423_v16  ;;  %v449_v18 = vpop.f32.mrb[3].mxu1 }
 0x116   :  { %v460_v19 = vpop.f32.mrb[0].mxu0 }
 0x117   :  { %v320_v20 = vpop.f32.mrb[1].mxu0 }
 0x11b   :  { %v479_v21 = vpop.eup %478 }
 0x11c   :  { %v156_v22 = vadd.f32 1.0, %v479_v21 }
 0x11e   :  { %480 = vrcp.f32 %v156_v22 }
 0x128   :  { %v481_v27 = vpop.eup %480 }
 0x129   :  { %230 = vst [vmem:[#allocation2] sm:$0x3] %v481_v27  ;;  %v238_v28 = vmul.f32 %v481_v27, %v425_v26 }
 0x12b   :  { %v239_v31 = vadd.f32 %v238_v28, %v226_v17 }
 0x12d   :  { %240 = vst [vmem:[#allocation3] sm:$0x3] %v239_v31 }
 0x130   :  { %v428_v34 = vld.sshfl [vmem:[#allocation2] sm:$0x11 pattern:$0x75316420] }
 0x131   :  { %v338_v35 = vcombine.high %v428_v34, %v428_v34  ;;  %v345_v36 = vrot.slane %v428_v34, %v344_v32 }
 0x133   :  { %v352_v37 = vrot.slane %v338_v35, %v344_v32  ;;  %v356_v38 = vrot.slane %v345_v36, %v355_v33 }
 0x134   :  { %v429_v39 = vld.sshfl [vmem:[#allocation3] sm:$0x11 pattern:$0x75316420] }
 0x135   :  { %v360_v40 = vrot.slane %v352_v37, %v355_v33  ;;  %v374_v41 = vcombine.high %v429_v39, %v429_v39  ;;  %v381_v42 = vrot.slane %v429_v39, %v344_v32  ;;  %v363_v44 = vmul.f32 %v356_v38, %v320_v20 }
 0x137   :  { %v388_v43 = vrot.slane %v374_v41, %v344_v32  ;;  %v392_v45 = vrot.slane %v381_v42, %v355_v33  ;;  %v364_v46 = vmul.f32 %v460_v19, %v360_v40 }
 0x139   :  { %v396_v47 = vrot.slane %v388_v43, %v355_v33  ;;  %v399_v48 = vadd.f32 %v392_v45, %v363_v44 }
 0x13b   :  { %v400_v49 = vadd.f32 %v396_v47, %v364_v46  ;;  %401 = vst [vmem:[#allocation10] sm:$0xff] %v399_v48 }
 0x13d   :  { %402 = vst [vmem:[#allocation10 + $0x8] sm:$0xff] %v400_v49 }
 0x13e   :  { %559 = shalt.err (!%p556_p0)
}
 0x13f   :  { %s560_s24 = scalar_lea.hbm %s707_s7, 256 }
 0x140   :  { %p561_p1 = scmp.ne.s32.totalorder %s707_s7, %s560_s24  ;;  %p564_p2 = scmp.lt.u32.totalorder %s560_s24, %s707_s7 }
 0x142   :  { %p566_p3 = pnand %p564_p2, %p561_p1 }
 0x144   :  { %569 = shalt.err (!%p566_p3)
}
 0x145   :  { %414 = dma.vmem_to_hbm [thread:$0]  %s409_s5, 256, %s707_s7, [#allocation6], %s577_s11, %s577_s11, %s578_s12  }
 0x146   :  { %574 = dma.done.wait [#allocation6], 256  }
 0x147   :  { %575 = vsyncadd [#allocation6], 4294967040 }
 0x148   :  { %418 = vsyncpa [#allocation5], 1 }
 0x149   :  { %419 = vsyncpa [#allocation8], 1 }
 0x14a   :  { %420 = vsyncpa [#allocation6], 1 }

</bundles_post_ra>
